<compile_context>
chip_gen: v7x
topology: tpu7x:2x2x1
jax: 0.10.0
libtpu: 0.0.40
codegen_flags: <defaults>
</compile_context>

<pallas_src>
import math
import jax
import jax.numpy as jnp
from jax import lax
from jax.experimental import pallas as pl
from jax.experimental.pallas import tpu as pltpu

# ---- model dimensions (small, consistent with a toy text encoder) ----
B, S, H = 2, 8, 32          # batch, sequence length, hidden size
NH, HD = 2, 16              # num heads, head dim (NH * HD == H)
F = 64                      # FFN intermediate size
VOCAB = 100
LN_EPS = 1e-12

T = B * S                   # flattened token count (batch folded into sublanes)
LANE = 128                  # lane width for padded pooler output
QKV_W = 3 * NH * HD         # 96

# packed matrix-slab column offsets
C_QKV = 0
C_WO = C_QKV + QKV_W        # 96
C_W1 = C_WO + H             # 128
C_WP = C_W1 + F             # 192
C_W2 = C_WP + LANE          # 320
WM_COLS = C_W2 + H          # 352
WM_ROWS = max(H, F)         # 64

# packed vector-slab row indices (each row is one 128-lane padded vector)
R_LN0G, R_LN0B, R_BQKV, R_BO = 0, 1, 2, 3
R_LN1G, R_LN1B, R_B1, R_B2 = 4, 5, 6, 7
R_LN2G, R_LN2B, R_BP = 8, 9, 10
NVEC = 11


def _gelu(x):
    c = math.sqrt(2.0 / math.pi)
    return 0.5 * x * (1.0 + jnp.tanh(c * (x + 0.044715 * x * x * x)))


def _layer_norm(x, g, b):
    mu = jnp.mean(x, axis=-1, keepdims=True)
    var = jnp.mean((x - mu) ** 2, axis=-1, keepdims=True)
    return (x - mu) * jax.lax.rsqrt(var + LN_EPS) * g + b


# --------------------------- Pallas kernel ---------------------------
def encoder_kernel(emb_ref, bias_ref, wm_ref, vec_ref, out_ref):
    x = emb_ref[...]                      # (T, H)  whole flattened batch
    bias = bias_ref[...]                  # (T, T)  block-diag + key-pad additive mask
    wm = wm_ref[...]                      # (WM_ROWS, WM_COLS) packed matrices
    vec = vec_ref[...]                    # (NVEC, 128) packed vectors

    # -- unpack vectors (static slices, zero runtime cost) --
    ln0_g = vec[R_LN0G:R_LN0G + 1, :H]
    ln0_b = vec[R_LN0B:R_LN0B + 1, :H]
    b_qkv = vec[R_BQKV:R_BQKV + 1, :QKV_W]
    b_o = vec[R_BO:R_BO + 1, :H]
    ln1_g = vec[R_LN1G:R_LN1G + 1, :H]
    ln1_b = vec[R_LN1B:R_LN1B + 1, :H]
    b_1 = vec[R_B1:R_B1 + 1, :F]
    b_2 = vec[R_B2:R_B2 + 1, :H]
    ln2_g = vec[R_LN2G:R_LN2G + 1, :H]
    ln2_b = vec[R_LN2B:R_LN2B + 1, :H]
    b_p = vec[R_BP:R_BP + 1, :]           # (1, 128) zero-padded pooler bias

    # -- unpack matrices --
    w_qkv = wm[:H, C_QKV:C_QKV + QKV_W]   # (H, 96)
    w_o = wm[:H, C_WO:C_WO + H]           # (H, H) = stacked per-head output proj
    w_1 = wm[:H, C_W1:C_W1 + F]           # (H, F)
    w_p = wm[:H, C_WP:C_WP + LANE]        # (H, 128) zero-padded pooler weight
    w_2 = wm[:, C_W2:C_W2 + H]            # (F, H)

    # embedding LayerNorm
    x = _layer_norm(x, ln0_g, ln0_b)

    # fused QKV projection (one MXU pass for the whole batch, all heads)
    qkv = jnp.dot(x, w_qkv, preferred_element_type=jnp.float32) + b_qkv   # (T, 96)

    scale = 1.0 / math.sqrt(HD)
    ctx_heads = []
    for h in range(NH):                   # NH=2, statically unrolled
        q = qkv[:, h * HD:(h + 1) * HD]
        k = qkv[:, NH * HD + h * HD:NH * HD + (h + 1) * HD]
        v = qkv[:, 2 * NH * HD + h * HD:2 * NH * HD + (h + 1) * HD]
        # q @ k^T without materializing a transpose
        s = lax.dot_general(q, k, (((1,), (1,)), ((), ())),
                            preferred_element_type=jnp.float32) * scale + bias
        s = s - jnp.max(s, axis=-1, keepdims=True)
        p = jnp.exp(s)
        p = p * pl.reciprocal(jnp.sum(p, axis=-1, keepdims=True), approx=False)
        ctx_heads.append(jnp.dot(p, v, preferred_element_type=jnp.float32))  # (T, HD)
    ctx = jnp.concatenate(ctx_heads, axis=-1)                                # (T, H)

    attn = jnp.dot(ctx, w_o, preferred_element_type=jnp.float32) + b_o
    x = _layer_norm(x + attn, ln1_g, ln1_b)

    # feed-forward
    hid = _gelu(jnp.dot(x, w_1, preferred_element_type=jnp.float32) + b_1)
    ffn = jnp.dot(hid, w_2, preferred_element_type=jnp.float32) + b_2
    x = _layer_norm(x + ffn, ln2_g, ln2_b)

    # BERT-style pooler: pick CLS rows (row b*S) with a tiny 0/1 selection matmul,
    # then tanh(dense(.)) with 128-lane-padded weights -> single lane-dense store.
    rows = lax.broadcasted_iota(jnp.int32, (B, T), 0)
    cols = lax.broadcasted_iota(jnp.int32, (B, T), 1)
    sel = (cols == rows * S).astype(jnp.float32)                            # (B, T)
    cls = jnp.dot(sel, x, preferred_element_type=jnp.float32)               # (B, H)
    pooled = jnp.tanh(jnp.dot(cls, w_p, preferred_element_type=jnp.float32) + b_p)
    out_ref[...] = pooled                                                   # (B, 128)


# --------------------------- params ---------------------------
def init_params(key):
    ks = jax.random.split(key, 18)

    def n(k, shape, scale=0.05):
        return scale * jax.random.normal(k, shape, jnp.float32)

    return dict(
        tok_emb=n(ks[0], (VOCAB, H)),
        pos_emb=n(ks[1], (S, H)),
        ln0_g=jnp.ones((1, H), jnp.float32), ln0_b=jnp.zeros((1, H), jnp.float32),
        wqh=n(ks[2], (NH, H, HD)), bqh=n(ks[3], (NH, 1, HD)),
        wkh=n(ks[4], (NH, H, HD)), bkh=n(ks[5], (NH, 1, HD)),
        wvh=n(ks[6], (NH, H, HD)), bvh=n(ks[7], (NH, 1, HD)),
        woh=n(ks[8], (NH, HD, H)), bo=n(ks[9], (1, H)),
        ln1_g=jnp.ones((1, H), jnp.float32), ln1_b=jnp.zeros((1, H), jnp.float32),
        w1=n(ks[10], (H, F)), b1=n(ks[11], (1, F)),
        w2=n(ks[12], (F, H)), b2=n(ks[13], (1, H)),
        ln2_g=jnp.ones((1, H), jnp.float32), ln2_b=jnp.zeros((1, H), jnp.float32),
        wp=n(ks[14], (H, H)), bp=n(ks[15], (1, H)),
    )


def pack_params(p):
    """Pre-concatenate all small weights into two kernel-friendly slabs."""
    # fused QKV weight: columns [Q_h0 | Q_h1 | K_h0 | K_h1 | V_h0 | V_h1]
    def heads_to_cols(w):                       # (NH, H, HD) -> (H, NH*HD)
        return jnp.transpose(w, (1, 0, 2)).reshape(H, NH * HD)

    w_qkv = jnp.concatenate(
        [heads_to_cols(p["wqh"]), heads_to_cols(p["wkh"]), heads_to_cols(p["wvh"])],
        axis=1)                                                     # (H, 96)
    b_qkv = jnp.concatenate(
        [p["bqh"].reshape(NH * HD), p["bkh"].reshape(NH * HD),
         p["bvh"].reshape(NH * HD)], axis=0)                        # (96,)
    w_o = p["woh"].reshape(NH * HD, H)                              # (H, H)

    wm = jnp.zeros((WM_ROWS, WM_COLS), jnp.float32)
    wm = wm.at[:H, C_QKV:C_QKV + QKV_W].set(w_qkv)
    wm = wm.at[:H, C_WO:C_WO + H].set(w_o)
    wm = wm.at[:H, C_W1:C_W1 + F].set(p["w1"])
    wm = wm.at[:H, C_WP:C_WP + H].set(p["wp"])      # lanes H..127 stay zero
    wm = wm.at[:, C_W2:C_W2 + H].set(p["w2"])

    vec = jnp.zeros((NVEC, LANE), jnp.float32)
    vec = vec.at[R_LN0G, :H].set(p["ln0_g"].reshape(H))
    vec = vec.at[R_LN0B, :H].set(p["ln0_b"].reshape(H))
    vec = vec.at[R_BQKV, :QKV_W].set(b_qkv)
    vec = vec.at[R_BO, :H].set(p["bo"].reshape(H))
    vec = vec.at[R_LN1G, :H].set(p["ln1_g"].reshape(H))
    vec = vec.at[R_LN1B, :H].set(p["ln1_b"].reshape(H))
    vec = vec.at[R_B1, :F].set(p["b1"].reshape(F))
    vec = vec.at[R_B2, :H].set(p["b2"].reshape(H))
    vec = vec.at[R_LN2G, :H].set(p["ln2_g"].reshape(H))
    vec = vec.at[R_LN2B, :H].set(p["ln2_b"].reshape(H))
    vec = vec.at[R_BP, :H].set(p["bp"].reshape(H))  # lanes H..127 stay zero

    return dict(tok_emb=p["tok_emb"], pos_emb=p["pos_emb"], wm=wm, vec=vec)


# --------------------------- wrapper ---------------------------
def address_encoder2_forward(packed, input_ids, attention_mask):
    # glue: embedding gather + position add (a vocab gather has no clean tile pattern)
    emb = (packed["tok_emb"][input_ids] + packed["pos_emb"][None, :, :])
    emb = emb.reshape(T, H).astype(jnp.float32)

    # additive attention bias over the flattened batch:
    # 0 where (same batch element AND key not padded), else -1e9.
    batch_ids = jnp.repeat(jnp.arange(B, dtype=jnp.int32), S)
    key_valid = attention_mask.reshape(T) > 0
    allowed = (batch_ids[:, None] == batch_ids[None, :]) & key_valid[None, :]
    bias = jnp.where(allowed, 0.0, -1e9).astype(jnp.float32)        # (T, T)

    out = pl.pallas_call(
        encoder_kernel,
        out_shape=jax.ShapeDtypeStruct((B, LANE), jnp.float32),
        grid=(1,),
        in_specs=[
            pl.BlockSpec((T, H), lambda i: (0, 0)),                 # embeddings slab
            pl.BlockSpec((T, T), lambda i: (0, 0)),                 # attention bias
            pl.BlockSpec((WM_ROWS, WM_COLS), lambda i: (0, 0)),     # packed matrices
            pl.BlockSpec((NVEC, LANE), lambda i: (0, 0)),           # packed vectors
        ],
        out_specs=pl.BlockSpec((B, LANE), lambda i: (0, 0)),
        compiler_params=pltpu.CompilerParams(dimension_semantics=("arbitrary",)),
    )(emb, bias, packed["wm"], packed["vec"])
    return out[:, :H]                      # pooler_output: (batch, hidden)


# --------------------------- plain-JAX reference ---------------------------
def reference_forward(params, input_ids, attention_mask):
    emb = params["tok_emb"][input_ids] + params["pos_emb"][None]
    mask = attention_mask.astype(jnp.float32)
    outs = []
    for b in range(B):
        x = _layer_norm(emb[b], params["ln0_g"], params["ln0_b"])
        neg = (1.0 - mask[b][None, :]) * (-1e9)
        attn = jnp.zeros((S, H), jnp.float32)
        for h in range(NH):
            q = x @ params["wqh"][h] + params["bqh"][h]
            k = x @ params["wkh"][h] + params["bkh"][h]
            v = x @ params["wvh"][h] + params["bvh"][h]
            s = (q @ k.T) / math.sqrt(HD) + neg
            s = s - jnp.max(s, -1, keepdims=True)
            p = jnp.exp(s)
            p = p / jnp.sum(p, -1, keepdims=True)
            attn = attn + (p @ v) @ params["woh"][h]
        attn = attn + params["bo"]
        x = _layer_norm(x + attn, params["ln1_g"], params["ln1_b"])
        hid = _gelu(x @ params["w1"] + params["b1"])
        x = _layer_norm(x + hid @ params["w2"] + params["b2"],
                        params["ln2_g"], params["ln2_b"])
        outs.append(jnp.tanh(x[0:1] @ params["wp"] + params["bp"]))
    return jnp.concatenate(outs, axis=0)


if __name__ == "__main__":
    key = jax.random.PRNGKey(0)
    kp, kid = jax.random.split(key)
    params = init_params(kp)
    packed = pack_params(params)

    input_ids = jax.random.randint(kid, (B, S), 0, VOCAB, dtype=jnp.int32)
    attention_mask = jnp.array([[1] * S, [1] * 6 + [0] * 2], dtype=jnp.int32)

    pooled = address_encoder2_forward(packed, input_ids, attention_mask)
    jax.block_until_ready(pooled)

    ref = reference_forward(params, input_ids, attention_mask)
    assert pooled.shape == (B, H)
    assert jnp.allclose(pooled, ref, atol=1e-4, rtol=1e-4), float(jnp.max(jnp.abs(pooled - ref)))
    print("KERNEL_OK")
</pallas_src>

<mosaic_0001>
module attributes {stable_mosaic.version = 11 : i64} {
  func.func @encoder_kernel(%arg0: i32, %arg1: memref<16x32xf32, #tpu.memory_space<vmem>>, %arg2: memref<16x16xf32, #tpu.memory_space<vmem>>, %arg3: memref<64x352xf32, #tpu.memory_space<vmem>>, %arg4: memref<11x128xf32, #tpu.memory_space<vmem>>, %arg5: memref<2x128xf32, #tpu.memory_space<vmem>>) attributes {dimension_semantics = [#tpu.dimension_semantics<arbitrary>], iteration_bounds = array<i64: 1>, scalar_prefetch = 0 : i64, scratch_operands = 0 : i64, tpu.core_type = #tpu.core_type<tc>, window_params = [{pipeline_mode = #tpu.pipeline_mode<synchronous>, transform_indices = @transform_0, window_bounds = array<i64: 16, 32>}, {pipeline_mode = #tpu.pipeline_mode<synchronous>, transform_indices = @transform_1, window_bounds = array<i64: 16, 16>}, {pipeline_mode = #tpu.pipeline_mode<synchronous>, transform_indices = @transform_2, window_bounds = array<i64: 64, 352>}, {pipeline_mode = #tpu.pipeline_mode<synchronous>, transform_indices = @transform_3, window_bounds = array<i64: 11, 128>}, {pipeline_mode = #tpu.pipeline_mode<synchronous>, transform_indices = @transform_4, window_bounds = array<i64: 2, 128>}]} {
    %c0 = arith.constant 0 : index
    %c0_0 = arith.constant 0 : index
    %0 = vector.load %arg1[%c0, %c0_0] : memref<16x32xf32, #tpu.memory_space<vmem>>, vector<16x32xf32>
    %c0_1 = arith.constant 0 : index
    %c0_2 = arith.constant 0 : index
    %1 = vector.load %arg2[%c0_1, %c0_2] : memref<16x16xf32, #tpu.memory_space<vmem>>, vector<16x16xf32>
    %c0_3 = arith.constant 0 : index
    %c0_4 = arith.constant 0 : index
    %2 = vector.load %arg3[%c0_3, %c0_4] : memref<64x352xf32, #tpu.memory_space<vmem>>, vector<64x352xf32>
    %c0_5 = arith.constant 0 : index
    %c0_6 = arith.constant 0 : index
    %3 = vector.load %arg4[%c0_5, %c0_6] : memref<11x128xf32, #tpu.memory_space<vmem>>, vector<11x128xf32>
    %4 = vector.extract_strided_slice %3 {offsets = [0, 0], sizes = [1, 32], strides = [1, 1]} : vector<11x128xf32> to vector<1x32xf32>
    %5 = vector.extract_strided_slice %3 {offsets = [1, 0], sizes = [1, 32], strides = [1, 1]} : vector<11x128xf32> to vector<1x32xf32>
    %6 = vector.extract_strided_slice %3 {offsets = [2, 0], sizes = [1, 96], strides = [1, 1]} : vector<11x128xf32> to vector<1x96xf32>
    %7 = vector.extract_strided_slice %3 {offsets = [3, 0], sizes = [1, 32], strides = [1, 1]} : vector<11x128xf32> to vector<1x32xf32>
    %8 = vector.extract_strided_slice %3 {offsets = [4, 0], sizes = [1, 32], strides = [1, 1]} : vector<11x128xf32> to vector<1x32xf32>
    %9 = vector.extract_strided_slice %3 {offsets = [5, 0], sizes = [1, 32], strides = [1, 1]} : vector<11x128xf32> to vector<1x32xf32>
    %10 = vector.extract_strided_slice %3 {offsets = [6, 0], sizes = [1, 64], strides = [1, 1]} : vector<11x128xf32> to vector<1x64xf32>
    %11 = vector.extract_strided_slice %3 {offsets = [7, 0], sizes = [1, 32], strides = [1, 1]} : vector<11x128xf32> to vector<1x32xf32>
    %12 = vector.extract_strided_slice %3 {offsets = [8, 0], sizes = [1, 32], strides = [1, 1]} : vector<11x128xf32> to vector<1x32xf32>
    %13 = vector.extract_strided_slice %3 {offsets = [9, 0], sizes = [1, 32], strides = [1, 1]} : vector<11x128xf32> to vector<1x32xf32>
    %14 = vector.extract_strided_slice %3 {offsets = [10, 0], sizes = [1, 128], strides = [1, 1]} : vector<11x128xf32> to vector<1x128xf32>
    %15 = vector.extract_strided_slice %2 {offsets = [0, 0], sizes = [32, 96], strides = [1, 1]} : vector<64x352xf32> to vector<32x96xf32>
    %16 = vector.extract_strided_slice %2 {offsets = [0, 96], sizes = [32, 32], strides = [1, 1]} : vector<64x352xf32> to vector<32x32xf32>
    %17 = vector.extract_strided_slice %2 {offsets = [0, 128], sizes = [32, 64], strides = [1, 1]} : vector<64x352xf32> to vector<32x64xf32>
    %18 = vector.extract_strided_slice %2 {offsets = [0, 192], sizes = [32, 128], strides = [1, 1]} : vector<64x352xf32> to vector<32x128xf32>
    %19 = vector.extract_strided_slice %2 {offsets = [0, 320], sizes = [64, 32], strides = [1, 1]} : vector<64x352xf32> to vector<64x32xf32>
    %cst = arith.constant dense<0.000000e+00> : vector<16xf32>
    %20 = vector.multi_reduction <add>, %0, %cst [1] : vector<16x32xf32> to vector<16xf32>
    %21 = vector.shape_cast %20 : vector<16xf32> to vector<16x1xf32>
    %cst_7 = arith.constant 3.200000e+01 : f32
    %22 = vector.broadcast %cst_7 : f32 to vector<16x1xf32>
    %23 = arith.divf %21, %22 : vector<16x1xf32>
    %24 = vector.broadcast %23 : vector<16x1xf32> to vector<16x32xf32>
    %25 = arith.subf %0, %24 : vector<16x32xf32>
    %26 = arith.mulf %25, %25 : vector<16x32xf32>
    %cst_8 = arith.constant dense<0.000000e+00> : vector<16xf32>
    %27 = vector.multi_reduction <add>, %26, %cst_8 [1] : vector<16x32xf32> to vector<16xf32>
    %28 = vector.shape_cast %27 : vector<16xf32> to vector<16x1xf32>
    %cst_9 = arith.constant 3.200000e+01 : f32
    %29 = vector.broadcast %cst_9 : f32 to vector<16x1xf32>
    %30 = arith.divf %28, %29 : vector<16x1xf32>
    %31 = vector.broadcast %23 : vector<16x1xf32> to vector<16x32xf32>
    %32 = arith.subf %0, %31 : vector<16x32xf32>
    %cst_10 = arith.constant 9.99999996E-13 : f32
    %33 = vector.broadcast %cst_10 : f32 to vector<16x1xf32>
    %34 = arith.addf %30, %33 : vector<16x1xf32>
    %35 = math.rsqrt %34 : vector<16x1xf32>
    %36 = vector.broadcast %35 : vector<16x1xf32> to vector<16x32xf32>
    %37 = arith.mulf %32, %36 : vector<16x32xf32>
    %38 = vector.broadcast %4 : vector<1x32xf32> to vector<16x32xf32>
    %39 = arith.mulf %37, %38 : vector<16x32xf32>
    %40 = vector.broadcast %5 : vector<1x32xf32> to vector<16x32xf32>
    %41 = arith.addf %39, %40 : vector<16x32xf32>
    %cst_11 = arith.constant dense<0.000000e+00> : vector<16x96xf32>
    %42 = tpu.matmul %41, %15, %cst_11 {dimension_numbers = #tpu.dot_dimension_numbers<[1], [0], [0], [1], [0, 0, 1, 1], [], []>} : vector<16x32xf32>, vector<32x96xf32>, vector<16x96xf32> -> vector<16x96xf32>
    %43 = vector.broadcast %6 : vector<1x96xf32> to vector<16x96xf32>
    %44 = arith.addf %42, %43 : vector<16x96xf32>
    %45 = vector.extract_strided_slice %44 {offsets = [0, 0], sizes = [16, 16], strides = [1, 1]} : vector<16x96xf32> to vector<16x16xf32>
    %46 = vector.extract_strided_slice %44 {offsets = [0, 32], sizes = [16, 16], strides = [1, 1]} : vector<16x96xf32> to vector<16x16xf32>
    %47 = vector.extract_strided_slice %44 {offsets = [0, 64], sizes = [16, 16], strides = [1, 1]} : vector<16x96xf32> to vector<16x16xf32>
    %cst_12 = arith.constant dense<0.000000e+00> : vector<16x16xf32>
    %48 = tpu.matmul %45, %46, %cst_12 {dimension_numbers = #tpu.dot_dimension_numbers<[1], [1], [0], [0], [0, 0, 1, 0], [], []>} : vector<16x16xf32>, vector<16x16xf32>, vector<16x16xf32> -> vector<16x16xf32>
    %cst_13 = arith.constant 2.500000e-01 : f32
    %49 = vector.broadcast %cst_13 : f32 to vector<16x16xf32>
    %50 = arith.mulf %48, %49 : vector<16x16xf32>
    %51 = arith.addf %50, %1 : vector<16x16xf32>
    %cst_14 = arith.constant dense<0xFF800000> : vector<16xf32>
    %52 = vector.multi_reduction <maximumf>, %51, %cst_14 [1] : vector<16x16xf32> to vector<16xf32>
    %53 = vector.shape_cast %52 : vector<16xf32> to vector<16x1xf32>
    %54 = vector.broadcast %53 : vector<16x1xf32> to vector<16x16xf32>
    %55 = arith.subf %51, %54 : vector<16x16xf32>
    %56 = math.exp %55 : vector<16x16xf32>
    %cst_15 = arith.constant dense<0.000000e+00> : vector<16xf32>
    %57 = vector.multi_reduction <add>, %56, %cst_15 [1] : vector<16x16xf32> to vector<16xf32>
    %58 = vector.shape_cast %57 : vector<16xf32> to vector<16x1xf32>
    %59 = tpu.reciprocal %58 : vector<16x1xf32> -> vector<16x1xf32>
    %60 = vector.broadcast %59 : vector<16x1xf32> to vector<16x16xf32>
    %61 = arith.mulf %56, %60 : vector<16x16xf32>
    %cst_16 = arith.constant dense<0.000000e+00> : vector<16x16xf32>
    %62 = tpu.matmul %61, %47, %cst_16 {dimension_numbers = #tpu.dot_dimension_numbers<[1], [0], [0], [1], [0, 0, 1, 1], [], []>} : vector<16x16xf32>, vector<16x16xf32>, vector<16x16xf32> -> vector<16x16xf32>
    %63 = vector.extract_strided_slice %44 {offsets = [0, 16], sizes = [16, 16], strides = [1, 1]} : vector<16x96xf32> to vector<16x16xf32>
    %64 = vector.extract_strided_slice %44 {offsets = [0, 48], sizes = [16, 16], strides = [1, 1]} : vector<16x96xf32> to vector<16x16xf32>
    %65 = vector.extract_strided_slice %44 {offsets = [0, 80], sizes = [16, 16], strides = [1, 1]} : vector<16x96xf32> to vector<16x16xf32>
    %cst_17 = arith.constant dense<0.000000e+00> : vector<16x16xf32>
    %66 = tpu.matmul %63, %64, %cst_17 {dimension_numbers = #tpu.dot_dimension_numbers<[1], [1], [0], [0], [0, 0, 1, 0], [], []>} : vector<16x16xf32>, vector<16x16xf32>, vector<16x16xf32> -> vector<16x16xf32>
    %cst_18 = arith.constant 2.500000e-01 : f32
    %67 = vector.broadcast %cst_18 : f32 to vector<16x16xf32>
    %68 = arith.mulf %66, %67 : vector<16x16xf32>
    %69 = arith.addf %68, %1 : vector<16x16xf32>
    %cst_19 = arith.constant dense<0xFF800000> : vector<16xf32>
    %70 = vector.multi_reduction <maximumf>, %69, %cst_19 [1] : vector<16x16xf32> to vector<16xf32>
    %71 = vector.shape_cast %70 : vector<16xf32> to vector<16x1xf32>
    %72 = vector.broadcast %71 : vector<16x1xf32> to vector<16x16xf32>
    %73 = arith.subf %69, %72 : vector<16x16xf32>
    %74 = math.exp %73 : vector<16x16xf32>
    %cst_20 = arith.constant dense<0.000000e+00> : vector<16xf32>
    %75 = vector.multi_reduction <add>, %74, %cst_20 [1] : vector<16x16xf32> to vector<16xf32>
    %76 = vector.shape_cast %75 : vector<16xf32> to vector<16x1xf32>
    %77 = tpu.reciprocal %76 : vector<16x1xf32> -> vector<16x1xf32>
    %78 = vector.broadcast %77 : vector<16x1xf32> to vector<16x16xf32>
    %79 = arith.mulf %74, %78 : vector<16x16xf32>
    %cst_21 = arith.constant dense<0.000000e+00> : vector<16x16xf32>
    %80 = tpu.matmul %79, %65, %cst_21 {dimension_numbers = #tpu.dot_dimension_numbers<[1], [0], [0], [1], [0, 0, 1, 1], [], []>} : vector<16x16xf32>, vector<16x16xf32>, vector<16x16xf32> -> vector<16x16xf32>
    %81 = tpu.concatenate %62, %80 in 1 : vector<16x16xf32>, vector<16x16xf32> -> vector<16x32xf32>
    %cst_22 = arith.constant dense<0.000000e+00> : vector<16x32xf32>
    %82 = tpu.matmul %81, %16, %cst_22 {dimension_numbers = #tpu.dot_dimension_numbers<[1], [0], [0], [1], [0, 0, 1, 1], [], []>} : vector<16x32xf32>, vector<32x32xf32>, vector<16x32xf32> -> vector<16x32xf32>
    %83 = vector.broadcast %7 : vector<1x32xf32> to vector<16x32xf32>
    %84 = arith.addf %82, %83 : vector<16x32xf32>
    %85 = arith.addf %41, %84 : vector<16x32xf32>
    %cst_23 = arith.constant dense<0.000000e+00> : vector<16xf32>
    %86 = vector.multi_reduction <add>, %85, %cst_23 [1] : vector<16x32xf32> to vector<16xf32>
    %87 = vector.shape_cast %86 : vector<16xf32> to vector<16x1xf32>
    %cst_24 = arith.constant 3.200000e+01 : f32
    %88 = vector.broadcast %cst_24 : f32 to vector<16x1xf32>
    %89 = arith.divf %87, %88 : vector<16x1xf32>
    %90 = vector.broadcast %89 : vector<16x1xf32> to vector<16x32xf32>
    %91 = arith.subf %85, %90 : vector<16x32xf32>
    %92 = arith.mulf %91, %91 : vector<16x32xf32>
    %cst_25 = arith.constant dense<0.000000e+00> : vector<16xf32>
    %93 = vector.multi_reduction <add>, %92, %cst_25 [1] : vector<16x32xf32> to vector<16xf32>
    %94 = vector.shape_cast %93 : vector<16xf32> to vector<16x1xf32>
    %cst_26 = arith.constant 3.200000e+01 : f32
    %95 = vector.broadcast %cst_26 : f32 to vector<16x1xf32>
    %96 = arith.divf %94, %95 : vector<16x1xf32>
    %97 = vector.broadcast %89 : vector<16x1xf32> to vector<16x32xf32>
    %98 = arith.subf %85, %97 : vector<16x32xf32>
    %cst_27 = arith.constant 9.99999996E-13 : f32
    %99 = vector.broadcast %cst_27 : f32 to vector<16x1xf32>
    %100 = arith.addf %96, %99 : vector<16x1xf32>
    %101 = math.rsqrt %100 : vector<16x1xf32>
    %102 = vector.broadcast %101 : vector<16x1xf32> to vector<16x32xf32>
    %103 = arith.mulf %98, %102 : vector<16x32xf32>
    %104 = vector.broadcast %8 : vector<1x32xf32> to vector<16x32xf32>
    %105 = arith.mulf %103, %104 : vector<16x32xf32>
    %106 = vector.broadcast %9 : vector<1x32xf32> to vector<16x32xf32>
    %107 = arith.addf %105, %106 : vector<16x32xf32>
    %cst_28 = arith.constant dense<0.000000e+00> : vector<16x64xf32>
    %108 = tpu.matmul %107, %17, %cst_28 {dimension_numbers = #tpu.dot_dimension_numbers<[1], [0], [0], [1], [0, 0, 1, 1], [], []>} : vector<16x32xf32>, vector<32x64xf32>, vector<16x64xf32> -> vector<16x64xf32>
    %109 = vector.broadcast %10 : vector<1x64xf32> to vector<16x64xf32>
    %110 = arith.addf %108, %109 : vector<16x64xf32>
    %cst_29 = arith.constant 5.000000e-01 : f32
    %111 = vector.broadcast %cst_29 : f32 to vector<16x64xf32>
    %112 = arith.mulf %111, %110 : vector<16x64xf32>
    %cst_30 = arith.constant 4.471500e-02 : f32
    %113 = vector.broadcast %cst_30 : f32 to vector<16x64xf32>
    %114 = arith.mulf %113, %110 : vector<16x64xf32>
    %115 = arith.mulf %114, %110 : vector<16x64xf32>
    %116 = arith.mulf %115, %110 : vector<16x64xf32>
    %117 = arith.addf %110, %116 : vector<16x64xf32>
    %cst_31 = arith.constant 0.797884583 : f32
    %118 = vector.broadcast %cst_31 : f32 to vector<16x64xf32>
    %119 = arith.mulf %118, %117 : vector<16x64xf32>
    %120 = math.tanh %119 : vector<16x64xf32>
    %cst_32 = arith.constant 1.000000e+00 : f32
    %121 = vector.broadcast %cst_32 : f32 to vector<16x64xf32>
    %122 = arith.addf %121, %120 : vector<16x64xf32>
    %123 = arith.mulf %112, %122 : vector<16x64xf32>
    %cst_33 = arith.constant dense<0.000000e+00> : vector<16x32xf32>
    %124 = tpu.matmul %123, %19, %cst_33 {dimension_numbers = #tpu.dot_dimension_numbers<[1], [0], [0], [1], [0, 0, 1, 1], [], []>} : vector<16x64xf32>, vector<64x32xf32>, vector<16x32xf32> -> vector<16x32xf32>
    %125 = vector.broadcast %11 : vector<1x32xf32> to vector<16x32xf32>
    %126 = arith.addf %124, %125 : vector<16x32xf32>
    %127 = arith.addf %107, %126 : vector<16x32xf32>
    %cst_34 = arith.constant dense<0.000000e+00> : vector<16xf32>
    %128 = vector.multi_reduction <add>, %127, %cst_34 [1] : vector<16x32xf32> to vector<16xf32>
    %129 = vector.shape_cast %128 : vector<16xf32> to vector<16x1xf32>
    %cst_35 = arith.constant 3.200000e+01 : f32
    %130 = vector.broadcast %cst_35 : f32 to vector<16x1xf32>
    %131 = arith.divf %129, %130 : vector<16x1xf32>
    %132 = vector.broadcast %131 : vector<16x1xf32> to vector<16x32xf32>
    %133 = arith.subf %127, %132 : vector<16x32xf32>
    %134 = arith.mulf %133, %133 : vector<16x32xf32>
    %cst_36 = arith.constant dense<0.000000e+00> : vector<16xf32>
    %135 = vector.multi_reduction <add>, %134, %cst_36 [1] : vector<16x32xf32> to vector<16xf32>
    %136 = vector.shape_cast %135 : vector<16xf32> to vector<16x1xf32>
    %cst_37 = arith.constant 3.200000e+01 : f32
    %137 = vector.broadcast %cst_37 : f32 to vector<16x1xf32>
    %138 = arith.divf %136, %137 : vector<16x1xf32>
    %139 = vector.broadcast %131 : vector<16x1xf32> to vector<16x32xf32>
    %140 = arith.subf %127, %139 : vector<16x32xf32>
    %cst_38 = arith.constant 9.99999996E-13 : f32
    %141 = vector.broadcast %cst_38 : f32 to vector<16x1xf32>
    %142 = arith.addf %138, %141 : vector<16x1xf32>
    %143 = math.rsqrt %142 : vector<16x1xf32>
    %144 = vector.broadcast %143 : vector<16x1xf32> to vector<16x32xf32>
    %145 = arith.mulf %140, %144 : vector<16x32xf32>
    %146 = vector.broadcast %12 : vector<1x32xf32> to vector<16x32xf32>
    %147 = arith.mulf %145, %146 : vector<16x32xf32>
    %148 = vector.broadcast %13 : vector<1x32xf32> to vector<16x32xf32>
    %149 = arith.addf %147, %148 : vector<16x32xf32>
    %150 = tpu.iota {dimensions = array<i32: 0>} : vector<2x16xi32>
    %151 = tpu.iota {dimensions = array<i32: 1>} : vector<2x16xi32>
    %c8_i32 = arith.constant 8 : i32
    %152 = vector.broadcast %c8_i32 : i32 to vector<2x16xi32>
    %153 = arith.muli %150, %152 : vector<2x16xi32>
    %154 = arith.cmpi eq, %151, %153 : vector<2x16xi32>
    %155 = arith.extui %154 : vector<2x16xi1> to vector<2x16xi32>
    %156 = arith.sitofp %155 : vector<2x16xi32> to vector<2x16xf32>
    %cst_39 = arith.constant dense<0.000000e+00> : vector<2x32xf32>
    %157 = tpu.matmul %156, %149, %cst_39 {dimension_numbers = #tpu.dot_dimension_numbers<[1], [0], [0], [1], [0, 0, 1, 1], [], []>} : vector<2x16xf32>, vector<16x32xf32>, vector<2x32xf32> -> vector<2x32xf32>
    %cst_40 = arith.constant dense<0.000000e+00> : vector<2x128xf32>
    %158 = tpu.matmul %157, %18, %cst_40 {dimension_numbers = #tpu.dot_dimension_numbers<[1], [0], [0], [1], [0, 0, 1, 1], [], []>} : vector<2x32xf32>, vector<32x128xf32>, vector<2x128xf32> -> vector<2x128xf32>
    %159 = vector.broadcast %14 : vector<1x128xf32> to vector<2x128xf32>
    %160 = arith.addf %158, %159 : vector<2x128xf32>
    %161 = math.tanh %160 : vector<2x128xf32>
    %c0_41 = arith.constant 0 : index
    %c0_42 = arith.constant 0 : index
    %162 = vector.load %arg5[%c0_41, %c0_42] : memref<2x128xf32, #tpu.memory_space<vmem>>, vector<2x128xf32>
    tpu.vector_store %arg5[%c0_41, %c0_42], %161 {strides = array<i32>} : memref<2x128xf32, #tpu.memory_space<vmem>>, vector<2x128xf32>,
    return
  }
  func.func @transform_0(%arg0: i32) -> (i32, i32) {
    %c0_i32 = arith.constant 0 : i32
    %c0_i32_0 = arith.constant 0 : i32
    %c0_i32_1 = arith.constant 0 : i32
    return %c0_i32, %c0_i32_0 : i32, i32
  }
  func.func @transform_1(%arg0: i32) -> (i32, i32) {
    %c0_i32 = arith.constant 0 : i32
    %c0_i32_0 = arith.constant 0 : i32
    %c0_i32_1 = arith.constant 0 : i32
    return %c0_i32, %c0_i32_0 : i32, i32
  }
  func.func @transform_2(%arg0: i32) -> (i32, i32) {
    %c0_i32 = arith.constant 0 : i32
    %c0_i32_0 = arith.constant 0 : i32
    %c0_i32_1 = arith.constant 0 : i32
    return %c0_i32, %c0_i32_0 : i32, i32
  }
  func.func @transform_3(%arg0: i32) -> (i32, i32) {
    %c0_i32 = arith.constant 0 : i32
    %c0_i32_0 = arith.constant 0 : i32
    %c0_i32_1 = arith.constant 0 : i32
    return %c0_i32, %c0_i32_0 : i32, i32
  }
  func.func @transform_4(%arg0: i32) -> (i32, i32) {
    %c0_i32 = arith.constant 0 : i32
    %c0_i32_0 = arith.constant 0 : i32
    %c0_i32_1 = arith.constant 0 : i32
    return %c0_i32, %c0_i32_0 : i32, i32
  }
}

</mosaic_0001>

<bundles_post_ra>
// kernel: tpu_custom_call.1
= control target key start
LH: loop header
LB: loop body
LE: loop exit
PB: predicated region body
PF: predicated region fallthrough
CT: control target
= control target key end

     0   :  { %9 = vsyncpa [#allocation3], 0  ;;  %s1996_s0 = inlined_call_operand.hbm [shape: f32[16,32], index: 0, kind: input, shape index: {}]   ;;  %s1997_s1 = inlined_call_operand.hbm [shape: f32[16,16], index: 1, kind: input, shape index: {}]   ;;  %s1998_s2 = inlined_call_operand.hbm [shape: f32[64,352], index: 2, kind: input, shape index: {}]   ;;  %s1999_s3 = inlined_call_operand.hbm [shape: f32[11,128], index: 3, kind: input, shape index: {}]   ;;  %s2000_s4 = inlined_call_operand.hbm [shape: f32[2,128], index: 4, kind: output, shape index: {}]  }
   0x1   :  { %10 = vsyncpa [#allocation6], 0 }
   0x2   :  { %11 = vsyncpa [#allocation9], 0 }
   0x3   :  { %12 = vsyncpa [#allocation4], 0  ;;  %s1709_s15 = smov [#allocation5]   ;;  %s1710_s17 = smov [#allocation2]  }
   0x4   :  { %s30_s16 = sshll.u32 %s1709_s15, 4  ;;  %s18_s18 = sshll.u32 %s1710_s17, 4  ;;  %s31_s16 = int_to_ptr.vmem [resolvable:$true] %s30_s16  ;;  %s1753_s18 = int_to_ptr.vmem [resolvable:$true] %s18_s18 }
   0x5   :  { %s1591_s21 = scalar_lea.hbm %s1997_s1, 256 }
   0x6   :  { %p1592_p0 = scmp.ne.s32.totalorder %s1997_s1, %s1591_s21  ;;  %p1595_p1 = scmp.lt.u32.totalorder %s1591_s21, %s1997_s1 }
   0x8   :  { %p1597_p2 = pnand %p1595_p1, %p1592_p0 }
   0xa   :  { %1600 = shalt.err (!%p1597_p2)
}
   0xb   :  { %s1601_s26 = scalar_lea.vmem %s31_s16, 256  ;;  %p1606_p4 = scmp.lt.s32.totalorder %s31_s16, %s31_s16 }
   0xc   :  { %p1602_p3 = scmp.ne.s32.totalorder %s31_s16, %s1601_s26  ;;  %p1607_p5 = scmp.lt.s32.totalorder %s1601_s26, %s1601_s26 }
   0xe   :  { %p1608_p6 = por %p1607_p5, %p1606_p4 }
  0x10   :  { %p1609_p7 = pnand %p1608_p6, %p1602_p3 }
  0x12   :  { %1612 = shalt.err (!%p1609_p7)
}
  0x13   :  { %s1711_s27 = smov 128   ;;  %s1712_s28 = smov 8  }
  0x14   :  { %36 = dma.hbm_to_vmem [thread:$0]  %s1997_s1, 256, %s31_s16, [#allocation6], %s1711_s27, %s1711_s27, %s1712_s28  }
  0x15   :  { %s1613_s7 = scalar_lea.hbm %s1996_s0, 256 }
  0x16   :  { %p1614_p8 = scmp.ne.s32.totalorder %s1996_s0, %s1613_s7  ;;  %p1617_p9 = scmp.lt.u32.totalorder %s1613_s7, %s1996_s0 }
  0x18   :  { %p1619_p10 = pnand %p1617_p9, %p1614_p8 }
  0x1a   :  { %1622 = shalt.err (!%p1619_p10)
}
  0x1b   :  { %s1623_s12 = scalar_lea.vmem %s1753_s18, 256  ;;  %p1628_p12 = scmp.lt.s32.totalorder %s1753_s18, %s1753_s18 }
  0x1c   :  { %p1624_p11 = scmp.ne.s32.totalorder %s1753_s18, %s1623_s12  ;;  %p1629_p13 = scmp.lt.s32.totalorder %s1623_s12, %s1623_s12 }
  0x1e   :  { %p1630_p0 = por %p1629_p13, %p1628_p12 }
  0x20   :  { %p1631_p1 = pnand %p1630_p0, %p1624_p11 }
  0x22   :  { %1634 = shalt.err (!%p1631_p1)
}
  0x23   :  { %24 = dma.hbm_to_vmem [thread:$0]  %s1996_s0, 256, %s1753_s18, [#allocation3], %s1711_s27, %s1711_s27, %s1712_s28  }
  0x24   :  { %s1713_s14 = smov [#allocation7]   ;;  %s1635_s19 = scalar_lea.hbm %s1998_s2, 3072 }
  0x25   :  { %s42_s15 = sshll.u32 %s1713_s14, 4  ;;  %p1636_p2 = scmp.ne.s32.totalorder %s1998_s2, %s1635_s19  ;;  %s43_s15 = int_to_ptr.vmem [resolvable:$true] %s42_s15 }
  0x26   :  { %p1639_p3 = scmp.lt.u32.totalorder %s1635_s19, %s1998_s2 }
  0x28   :  { %p1641_p4 = pnand %p1639_p3, %p1636_p2 }
  0x2a   :  { %1644 = shalt.err (!%p1641_p4)
}
  0x2b   :  { %s1645_s24 = scalar_lea.vmem %s43_s15, 3072  ;;  %p1650_p6 = scmp.lt.s32.totalorder %s43_s15, %s43_s15 }
  0x2c   :  { %p1646_p5 = scmp.ne.s32.totalorder %s43_s15, %s1645_s24  ;;  %p1651_p7 = scmp.lt.s32.totalorder %s1645_s24, %s1645_s24 }
  0x2e   :  { %p1652_p8 = por %p1651_p7, %p1650_p6 }
  0x30   :  { %p1653_p9 = pnand %p1652_p8, %p1646_p5 }
  0x32   :  { %1656 = shalt.err (!%p1653_p9)
}
  0x33   :  { %s1714_s0 = smov 384   ;;  %s1715_s18 = smov 24  }
  0x34   :  { %48 = dma.hbm_to_vmem [thread:$0]  %s1998_s2, 3072, %s43_s15, [#allocation6], %s1714_s0, %s1714_s0, %s1715_s18  }
  0x35   :  { %s1716_s29 = smov [#allocation8]   ;;  %s1657_s7 = scalar_lea.hbm %s1999_s3, 256 }
  0x36   :  { %s54_s30 = sshll.u32 %s1716_s29, 4  ;;  %p1658_p10 = scmp.ne.s32.totalorder %s1999_s3, %s1657_s7  ;;  %s55_s30 = int_to_ptr.vmem [resolvable:$true] %s54_s30 }
  0x37   :  { %p1661_p11 = scmp.lt.u32.totalorder %s1657_s7, %s1999_s3 }
  0x39   :  { %p1663_p12 = pnand %p1661_p11, %p1658_p10 }
  0x3b   :  { %1666 = shalt.err (!%p1663_p12)
}
  0x3c   :  { %s1667_s12 = scalar_lea.vmem %s55_s30, 256  ;;  %p1672_p0 = scmp.lt.s32.totalorder %s55_s30, %s55_s30 }
  0x3d   :  { %p1668_p13 = scmp.ne.s32.totalorder %s55_s30, %s1667_s12  ;;  %p1673_p1 = scmp.lt.s32.totalorder %s1667_s12, %s1667_s12 }
  0x3f   :  { %p1674_p2 = por %p1673_p1, %p1672_p0 }
  0x41   :  { %p1675_p3 = pnand %p1674_p2, %p1668_p13 }
  0x43   :  { %1678 = shalt.err (!%p1675_p3)
}
  0x44   :  { %60 = dma.hbm_to_vmem [thread:$0]  %s1999_s3, 256, %s55_s30, [#allocation9], %s1711_s27, %s1711_s27, %s1712_s28  }
  0x45   :  { %1701 = dma.done.wait [#allocation3], 256  }
  0x46   :  { %1702 = vsyncadd [#allocation3], 4294967040 }
  0x47   :  { %1703 = dma.done.wait [#allocation6], 3328  }
  0x48   :  { %1704 = vsyncadd [#allocation6], 4294963968 }
  0x49   :  { %1705 = dma.done.wait [#allocation9], 256  }
  0x4a   :  { %1706 = vsyncadd [#allocation9], 4294967040  ;;  %vm95_vm0 = vcmask 261120   ;;  %v73_v0 = vld [vmem:[#allocation2] sm:$0xff]  ;;  %v74_v1 = vld [vmem:[#allocation2 + $0x8] sm:$0xff]  ;;  %v123_v23 = vlaneseq  ;;  %vm226_vm1 = vcmask 130048  }
  0x4b   :  { %v96_v2 = vsel %vm95_vm0, %v73_v0, 0.0  ;;  %v99_v3 = vsel %vm95_vm0, %v74_v1, 0.0  ;;  %v1821_v14 = vld [vmem:[#allocation7] sm:$0xff]  ;;  %v1823_v15 = vld [vmem:[#allocation7 + $0x18] sm:$0xff]  ;;  %v1825_v16 = vld [vmem:[#allocation7 + $0x30] sm:$0xff]  ;;  %s1717_s3 = smov 80  }
  0x4c   :  { %97 = vadd.xlane.f32.xlu0 %v96_v2  ;;  %v1517_v17 = vpack.i.bf16 %v1823_v15, %v1821_v14  ;;  %v1409_v18 = vpack.c.bf16 %v1823_v15, %v1821_v14  ;;  %v1831_v19 = vld [vmem:[#allocation7 + $0x48] sm:$0xff]  ;;  %v1836_v27 = vshrl.u32 %v123_v23, 7  ;;  %v1839_v30 = vld [vmem:[#allocation8] sm:$0xff]  ;;  %s1718_s27 = smov 96   ;;  %s1719_s28 = smov 112   ;;  %vm1418_vm2 = vmpackc.low %vm226_vm1, %vm226_vm1  ;;  %vm917_vm3 = vcmask 523264  }
  0x4d   :  { %v1413_v20 = vpack.c.bf16 %v1831_v19, %v1825_v16  ;;  %v76_v60 = vld [vmem:[#allocation5 + $0x8] sm:$0xff]  ;;  %v75_v63 = vld [vmem:[#allocation5] sm:$0xff]  ;;  %s1720_s13 = smov 48   ;;  %s1721_s14 = smov 64   ;;  %vm1725_vm4 = vmmov 0  }
  0x4e   :  { %1410 = vmatprep.subr.bf16.mxu0 %v1409_v18  ;;  %v125_v29 = vsub.s32 0, %v1836_v27  ;;  %v131_v31 = vsub.s32 1, %v1836_v27  ;;  %v137_v42 = vsub.s32 2, %v1836_v27  ;;  %s1722_s15 = smov 32   ;;  %s1723_s16 = smov 16  }
  0x4f   :  { %1412 = vmatpush3.bf16.msra.mxu0 %v1409_v18  ;;  %s1727_s17 = smov [#allocation10]  }
  0x50   :  { %100 = vadd.xlane.f32.xlu0 %v99_v3  ;;  %1414 = vmatprep.subr.bf16.mxu0 %v1413_v20  ;;  %v126_v32 = vrot.slane %v1839_v30, %v125_v29  ;;  %v132_v35 = vrot.slane %v1839_v30, %v131_v31  ;;  %v138_v43 = vrot.slane %v1839_v30, %v137_v42  ;;  %s1225_s19 = sshll.u32 %s1727_s17, 4  ;;  %s1226_s19 = int_to_ptr.vmem [resolvable:$true] %s1225_s19 }
  0x51   :  { %s1679_s20 = scalar_lea.vmem %s1226_s19, 32  ;;  %p1684_p5 = scmp.lt.s32.totalorder %s1226_s19, %s1226_s19 }
  0x52   :  { %p1680_p4 = scmp.ne.s32.totalorder %s1226_s19, %s1679_s20  ;;  %p1685_p6 = scmp.lt.s32.totalorder %s1679_s20, %s1679_s20 }
  0x53   :  { %1416 = vmatpush3.bf16.msra.mxu0 %v1413_v20 }
  0x54   :  { %p1686_p7 = por %p1685_p6, %p1684_p5 }
  0x56   :  { %p1687_p8 = pnand %p1686_p7, %p1680_p4 }
  0xd9   :  { %v98_v4 = vpop.xlane.xlu0 %97 }
  0xda   :  { %v103_v5 = vmul.f32 0.03125, %v98_v4 }
  0xdc   :  { %v105_v6 = vsub.f32 %v73_v0, %v103_v5 }
  0xdd   :  { %v101_v7 = vpop.xlane.xlu0 %100 }
  0xde   :  { %v104_v8 = vmul.f32 0.03125, %v101_v7  ;;  %v107_v9 = vmul.f32 %v105_v6, %v105_v6 }
  0xe0   :  { %v106_v10 = vsub.f32 %v74_v1, %v104_v8  ;;  %v109_v11 = vsel %vm95_vm0, %v107_v9, 0.0 }
  0xe1   :  { %110 = vadd.xlane.f32.xlu1 %v109_v11 }
  0xe2   :  { %v108_v12 = vmul.f32 %v106_v10, %v106_v10 }
  0xe4   :  { %v112_v13 = vsel %vm95_vm0, %v108_v12, 0.0 }
  0xe5   :  { %113 = vadd.xlane.f32.xlu1 %v112_v13 }
 0x16e   :  { %v111_v21 = vpop.xlane.xlu1 %110 }
 0x16f   :  { %v115_v22 = vmul.f32 0.03125, %v111_v21 }
 0x171   :  { %v117_v24 = vadd.f32 1e-12, %v115_v22 }
 0x172   :  { %v114_v25 = vpop.xlane.xlu1 %113 }
 0x173   :  { %1557 = vrsqrt.f32 %v117_v24  ;;  %v116_v26 = vmul.f32 0.03125, %v114_v25 }
 0x175   :  { %v118_v28 = vadd.f32 1e-12, %v116_v26 }
 0x177   :  { %1559 = vrsqrt.f32 %v118_v28 }
 0x17d   :  { %v1558_v33 = vpop.eup %1557 }
 0x17e   :  { %v121_v34 = vmul.f32 %v1558_v33, %v105_v6 }
 0x180   :  { %v127_v36 = vmul.f32 %v126_v32, %v121_v34 }
 0x181   :  { %v1560_v37 = vpop.eup %1559 }
 0x182   :  { %v122_v38 = vmul.f32 %v1560_v37, %v106_v10  ;;  %v1848_v39 = vadd.f32 %v132_v35, %v127_v36 }
 0x184   :  { %v128_v40 = vmul.f32 %v126_v32, %v122_v38  ;;  %1319 = vmatprep.mubr.msk.f32.mxu0 %vm95_vm0, %v1848_v39 }
 0x186   :  { %v1852_v41 = vadd.f32 %v132_v35, %v128_v40 }
 0x188   :  { %1320 = vmatmul.mubr.msk.f32.vlgmr.msra.gmra.mrb[0].mxu0 %vm95_vm0, %v1852_v41 }
 0x25b   :  { %v1321_v44 = vpop.f32.mrb[0].mxu0 }
 0x25c   :  { %v217_v45 = vadd.f32 %v1321_v44, %v138_v43  ;;  %v211_v46 = vpop.f32.mrb[1].mxu0 }
 0x25d   :  { %v212_v47 = vadd.f32 %v211_v46, %v138_v43  ;;  %v1522_v46 = vpack.i.bf16 %v1831_v19, %v1825_v16 }
 0x25f   :  { %1326 = vmatprep.mubr.msk.f32.mxu1 %vm226_vm1, %v212_v47  ;;  %v1861_v48 = vpack.i.bf16 %v217_v45, %v212_v47 }
 0x261   :  { %1503 = vrot.lane.b32.xlu1 %v1861_v48, %s1717_s3  ;;  %1498 = vrot.lane.b32.xlu0 %v1861_v48, %s1718_s27 }
 0x265   :  { %423 = vrot.lane.b32.xlu1 %v212_v47, %s1719_s28 }
 0x269   :  { %425 = vrot.lane.b32.xlu1 %v217_v45, %s1719_s28 }
 0x2d3   :  { %v1504_v49 = vpop.permute.xlu1 %1503  ;;  %v1499_v50 = vpop.permute.xlu0 %1498 }
 0x2d4   :  { %v1506_v51 = vunpack.i.h.bf16 %v1504_v49  ;;  %v1505_v52 = vunpack.i.l.bf16 %v1504_v49  ;;  %v1501_v53 = vunpack.i.h.bf16 %v1499_v50  ;;  %v1500_v54 = vunpack.i.l.bf16 %v1499_v50 }
 0x2d6   :  { %v1417_v55 = vpack.c.bf16 %v1501_v53, %v1500_v54  ;;  %v1427_v56 = vpack.c.bf16 %v1506_v51, %v1505_v52 }
 0x2d7   :  { %v424_v57 = vpop.permute.xlu1 %423 }
 0x2d8   :  { %1419 = vmatprep.subr.msk.bf16.mxu1 %vm1418_vm2, %v1417_v55 }
 0x2d9   :  { %1422 = vmatpush3.bf16.xpose.msk.msra.mxu1 %vm1418_vm2, %v1417_v55 }
 0x2da   :  { %1429 = vmatprep.subr.msk.bf16.mxu1 %vm1418_vm2, %v1427_v56 }
 0x2db   :  { %v426_v58 = vpop.permute.xlu1 %425 }
 0x2e0   :  { %1327 = vmatmul.mubr.msk.f32.vlgmr.msra.gmra.mrb[0].mxu1 %vm226_vm1, %v217_v45 }
 0x2e1   :  { %1432 = vmatpush3.bf16.xpose.msk.msra.mxu1 %vm1418_vm2, %v1427_v56  ;;  %1340 = vmatprep.mubr.msk.f32.mxu1 %vm226_vm1, %v424_v57 }
 0x2e8   :  { %1341 = vmatmul.mubr.msk.f32.vlgmr.msra.gmra.mrb[2].mxu1 %vm226_vm1, %v426_v58 }
 0x3b3   :  { %v1328_v59 = vpop.f32.mrb[0].mxu1 }
 0x3b4   :  { %v311_v61 = vmul.f32 0.25, %v1328_v59  ;;  %v301_v62 = vpop.f32.mrb[1].mxu1 }
 0x3b5   :  { %v310_v0 = vmul.f32 0.25, %v301_v62 }
 0x3b6   :  { %v313_v1 = vadd.f32 %v311_v61, %v76_v60 }
 0x3b7   :  { %v312_v2 = vadd.f32 %v310_v0, %v75_v63 }
 0x3b8   :  { %v317_v3 = vsel %vm226_vm1, %v313_v1, -inf }
 0x3b9   :  { %318 = vmax.xlane.f32.xlu1 %v317_v3  ;;  %v314_v4 = vsel %vm226_vm1, %v312_v2, -inf }
 0x3ba   :  { %315 = vmax.xlane.f32.xlu0 %v314_v4 }
 0x3bb   :  { %v1342_v5 = vpop.f32.mrb[2].mxu1 }
 0x3bc   :  { %v505_v6 = vpop.f32.mrb[3].mxu1  ;;  %v515_v7 = vmul.f32 0.25, %v1342_v5 }
 0x3bd   :  { %v514_v8 = vmul.f32 0.25, %v505_v6 }
 0x3be   :  { %v517_v11 = vadd.f32 %v515_v7, %v76_v60 }
 0x3bf   :  { %v516_v9 = vadd.f32 %v514_v8, %v75_v63 }
 0x3c0   :  { %v521_v12 = vsel %vm226_vm1, %v517_v11, -inf }
 0x3c1   :  { %v518_v10 = vsel %vm226_vm1, %v516_v9, -inf }
 0x3c2   :  { %519 = vmax.xlane.f32.xlu0 %v518_v10 }
 0x3c6   :  { %522 = vmax.xlane.f32.xlu0 %v521_v12 }
 0x446   :  { %v319_v13 = vpop.xlane.xlu1 %318 }
 0x447   :  { %v321_v18 = vsub.f32 %v313_v1, %v319_v13  ;;  %v316_v20 = vpop.xlane.xlu0 %315 }
 0x448   :  { %v320_v21 = vsub.f32 %v312_v2, %v316_v20 }
 0x449   :  { %v324_v22 = vmul.f32 1.442695, %v321_v18  ;;  %v639_v18 = vsub.s32 3, %v1836_v27 }
 0x44a   :  { %v322_v24 = vmul.f32 1.442695, %v320_v21 }
 0x44b   :  { %1561 = vpow2.f32 %v324_v22  ;;  %v640_v20 = vrot.slane %v1839_v30, %v639_v18 }
 0x44c   :  { %1563 = vpow2.f32 %v322_v24 }
 0x44f   :  { %v520_v25 = vpop.xlane.xlu0 %519 }
 0x450   :  { %v524_v26 = vsub.f32 %v516_v9, %v520_v25 }
 0x452   :  { %v526_v28 = vmul.f32 1.442695, %v524_v26 }
 0x453   :  { %v523_v32 = vpop.xlane.xlu0 %522 }
 0x454   :  { %1565 = vpow2.f32 %v526_v28  ;;  %v525_v33 = vsub.f32 %v517_v11, %v523_v32 }
 0x455   :  { %v1562_v34 = vpop.eup %1561 }
 0x456   :  { %v1564_v35 = vpop.eup %1563  ;;  %v528_v36 = vmul.f32 1.442695, %v525_v33  ;;  %v329_v37 = vsel %vm226_vm1, %v1562_v34, 0.0 }
 0x457   :  { %330 = vadd.xlane.f32.xlu1 %v329_v37  ;;  %v326_v38 = vsel %vm226_vm1, %v1564_v35, 0.0 }
 0x458   :  { %1567 = vpow2.f32 %v528_v36  ;;  %327 = vadd.xlane.f32.xlu0 %v326_v38 }
 0x45e   :  { %v1566_v40 = vpop.eup %1565 }
 0x45f   :  { %v530_v43 = vsel %vm226_vm1, %v1566_v40, 0.0 }
 0x460   :  { %531 = vadd.xlane.f32.xlu0 %v530_v43 }
 0x462   :  { %v1568_v44 = vpop.eup %1567 }
 0x463   :  { %v533_v45 = vsel %vm226_vm1, %v1568_v44, 0.0 }
 0x464   :  { %534 = vadd.xlane.f32.xlu1 %v533_v45 }
 0x475   :  { %1513 = vrot.lane.b32.xlu1 %v1861_v48, %s1720_s13 }
 0x476   :  { %1508 = vrot.lane.b32.xlu0 %v1861_v48, %s1721_s14 }
 0x479   :  { %1518 = vrot.lane.b32.xlu1 %v1517_v17, %s1722_s15 }
 0x47d   :  { %1523 = vrot.lane.b32.xlu1 %v1522_v46, %s1722_s15  ;;  %v1904_v46 = vld [vmem:[#allocation7 + $0x20] sm:$0xff] }
 0x4e4   :  { %v331_v49 = vpop.xlane.xlu1 %330 }
 0x4e5   :  { %v328_v47 = vpop.xlane.xlu0 %327 }
 0x4e6   :  { %1569 = vrcp.f32 %v328_v47 }
 0x4e7   :  { %1571 = vrcp.f32 %v331_v49  ;;  %v1908_v49 = vld [vmem:[#allocation7 + $0x38] sm:$0xff] }
 0x4ed   :  { %v532_v50 = vpop.xlane.xlu0 %531 }
 0x4ee   :  { %1573 = vrcp.f32 %v532_v50  ;;  %v1910_v50 = vld [vmem:[#allocation7 + $0x50] sm:$0xff] }
 0x4f0   :  { %v1570_v51 = vpop.eup %1569 }
 0x4f1   :  { %v535_v52 = vpop.xlane.xlu1 %534  ;;  %v1509_v53 = vpop.permute.xlu0 %1508  ;;  %v334_v54 = vmul.f32 %v1570_v51, %v1564_v35  ;;  %v1449_v51 = vpack.c.bf16 %v1910_v50, %v1908_v49 }
 0x4f2   :  { %1575 = vrcp.f32 %v535_v52  ;;  %v1511_v48 = vunpack.i.h.bf16 %v1509_v53  ;;  %v1510_v55 = vunpack.i.l.bf16 %v1509_v53  ;;  %v1572_v15 = vpop.eup %1571  ;;  %v79_v52 = vld [vmem:[#allocation7 + $0x10] sm:$0xff]  ;;  %v82_v53 = vld [vmem:[#allocation7 + $0x28] sm:$0xff] }
 0x4f3   :  { %1333 = vmatprep.mubr.msk.f32.mxu0 %vm226_vm1, %v334_v54  ;;  %v335_v57 = vmul.f32 %v1572_v15, %v1562_v34  ;;  %v85_v54 = vld [vmem:[#allocation7 + $0x40] sm:$0xff]  ;;  %v90_v15 = vld [vmem:[#allocation7 + $0x88] sm:$0xff] }
 0x4f4   :  { %v1423_v14 = vpack.c.bf16 %v1511_v48, %v1510_v55  ;;  %v1527_v48 = vpack.i.bf16 %v82_v53, %v79_v52  ;;  %v88_v55 = vld [vmem:[#allocation7 + $0x58] sm:$0xff] }
 0x4f5   :  { %v1514_v17 = vpop.permute.xlu1 %1513 }
 0x4f6   :  { %v1516_v16 = vunpack.i.h.bf16 %v1514_v17  ;;  %v1515_v19 = vunpack.i.l.bf16 %v1514_v17  ;;  %1424 = vmatprep.subr.bf16.mxu0 %v1423_v14  ;;  %v1532_v17 = vpack.i.bf16 %v88_v55, %v85_v54 }
 0x4f7   :  { %1426 = vmatpush3.bf16.msra.mxu0 %v1423_v14  ;;  %v89_v14 = vld [vmem:[#allocation7 + $0x70] sm:$0xff] }
 0x4f8   :  { %v1574_v56 = vpop.eup %1573  ;;  %v1433_v58 = vpack.c.bf16 %v1516_v16, %v1515_v19  ;;  %v1537_v16 = vpack.i.bf16 %v90_v15, %v89_v14  ;;  %v91_v19 = vld [vmem:[#allocation7 + $0xa0] sm:$0xff] }
 0x4f9   :  { %v538_v59 = vmul.f32 %v1574_v56, %v1566_v40  ;;  %v1519_v62 = vpop.permute.xlu1 %1518  ;;  %v92_v56 = vld [vmem:[#allocation7 + $0xb8] sm:$0xff] }
 0x4fa   :  { %1334 = vmatmul.mubr.msk.f32.vlgmr.msra.gmra.mrb[2].mxu0 %vm226_vm1, %v335_v57  ;;  %1434 = vmatprep.subr.bf16.mxu0 %v1433_v58  ;;  %v1521_v63 = vunpack.i.h.bf16 %v1519_v62  ;;  %v1520_v0 = vunpack.i.l.bf16 %v1519_v62  ;;  %v1542_v57 = vpack.i.bf16 %v92_v56, %v91_v19 }
 0x4fb   :  { %1436 = vmatpush3.bf16.msra.mxu0 %v1433_v58  ;;  %1347 = vmatprep.mubr.msk.f32.mxu0 %vm226_vm1, %v538_v59 }
 0x4fc   :  { %v1576_v60 = vpop.eup %1575  ;;  %v1437_v1 = vpack.c.bf16 %v1521_v63, %v1520_v0  ;;  %v768_v0 = vsub.s32 4, %v1836_v27 }
 0x4fd   :  { %v539_v61 = vmul.f32 %v1576_v60, %v1568_v44  ;;  %v1524_v2 = vpop.permute.xlu1 %1523 }
 0x4fe   :  { %v1526_v3 = vunpack.i.h.bf16 %v1524_v2  ;;  %v1525_v4 = vunpack.i.l.bf16 %v1524_v2  ;;  %1438 = vmatprep.subr.bf16.mxu0 %v1437_v1  ;;  %v769_v2 = vrot.slane %v1839_v30, %v768_v0 }
 0x4ff   :  { %1348 = vmatmul.mubr.msk.f32.vlgmr.msra.gmra.mrb[4].mxu0 %vm226_vm1, %v539_v61 }
 0x500   :  { %1440 = vmatpush3.bf16.msra.mxu0 %v1437_v1  ;;  %v1441_v5 = vpack.c.bf16 %v1526_v3, %v1525_v4  ;;  %v774_v1 = vsub.s32 5, %v1836_v27 }
 0x502   :  { %1442 = vmatprep.subr.bf16.mxu0 %v1441_v5 }
 0x504   :  { %1444 = vmatpush3.bf16.msra.mxu0 %v1441_v5  ;;  %v775_v5 = vrot.slane %v1839_v30, %v774_v1 }
 0x5cd   :  { %v1335_v6 = vpop.f32.mrb[2].mxu0 }
 0x5ce   :  { %v414_v7 = vpop.f32.mrb[3].mxu0 }
 0x5d2   :  { %v1349_v8 = vpop.f32.mrb[4].mxu0 }
 0x5d3   :  { %631 = vrot.lane.b32.xlu1 %v1349_v8, %s1723_s16  ;;  %v618_v9 = vpop.f32.mrb[5].mxu0 }
 0x5d4   :  { %629 = vrot.lane.b32.xlu0 %v618_v9, %s1723_s16 }
 0x645   :  { %v632_v10 = vpop.permute.xlu1 %631 }
 0x646   :  { %v630_v11 = vpop.permute.xlu0 %629  ;;  %v636_v13 = vsel %vm226_vm1, %v1335_v6, %v632_v10 }
 0x647   :  { %v635_v12 = vsel %vm226_vm1, %v414_v7, %v630_v11 }
 0x648   :  { %1358 = vmatprep.mubr.msk.f32.mxu0 %vm95_vm0, %v635_v12 }
 0x649   :  { %1359 = vmatmul.mubr.msk.f32.vlgmr.msra.gmra.mrb[6].mxu0 %vm95_vm0, %v636_v13 }
 0x71c   :  { %v1360_v21 = vpop.f32.mrb[6].mxu0 }
 0x71d   :  { %v735_v22 = vadd.f32 %v1360_v21, %v640_v20  ;;  %v729_v24 = vpop.f32.mrb[7].mxu0 }
 0x71e   :  { %v730_v25 = vadd.f32 %v729_v24, %v640_v20 }
 0x71f   :  { %v739_v26 = vadd.f32 %v735_v22, %v1852_v41 }
 0x720   :  { %v738_v28 = vadd.f32 %v730_v25, %v1848_v39  ;;  %v1902_v39 = vld [vmem:[#allocation7 + $0x8] sm:$0xff] }
 0x721   :  { %v743_v32 = vsel %vm95_vm0, %v739_v26, 0.0  ;;  %v1445_v47 = vpack.c.bf16 %v1904_v46, %v1902_v39 }
 0x722   :  { %744 = vadd.xlane.f32.xlu1 %v743_v32  ;;  %v740_v33 = vsel %vm95_vm0, %v738_v28, 0.0 }
 0x723   :  { %741 = vadd.xlane.f32.xlu0 %v740_v33  ;;  %1446 = vmatprep.subr.bf16.mxu1 %v1445_v47 }
 0x724   :  { %1448 = vmatpush3.bf16.msra.mxu1 %v1445_v47 }
 0x725   :  { %1450 = vmatprep.subr.bf16.mxu1 %v1449_v51 }
 0x728   :  { %1452 = vmatpush3.bf16.msra.mxu1 %v1449_v51 }
 0x733   :  { %1533 = vrot.lane.b32.xlu1 %v1532_v17, %s1721_s14 }
 0x737   :  { %1538 = vrot.lane.b32.xlu1 %v1537_v16, %s1721_s14 }
 0x73b   :  { %1543 = vrot.lane.b32.xlu1 %v1542_v57, %s1721_s14 }
 0x7af   :  { %v745_v34 = vpop.xlane.xlu1 %744 }
 0x7b0   :  { %v747_v35 = vmul.f32 0.03125, %v745_v34  ;;  %v742_v36 = vpop.xlane.xlu0 %741 }
 0x7b1   :  { %v746_v37 = vmul.f32 0.03125, %v742_v36 }
 0x7b2   :  { %v749_v38 = vsub.f32 %v739_v26, %v747_v35 }
 0x7b3   :  { %v748_v40 = vsub.f32 %v738_v28, %v746_v37  ;;  %v1935_v21 = vpop.permute.xlu1 %1533 }
 0x7b4   :  { %v751_v45 = vmul.f32 %v749_v38, %v749_v38  ;;  %v1536_v22 = vunpack.i.h.bf16 %v1935_v21  ;;  %v1535_v24 = vunpack.i.l.bf16 %v1935_v21 }
 0x7b5   :  { %v750_v43 = vmul.f32 %v748_v40, %v748_v40 }
 0x7b6   :  { %v755_v41 = vsel %vm95_vm0, %v751_v45, 0.0  ;;  %v1457_v25 = vpack.c.bf16 %v1536_v22, %v1535_v24 }
 0x7b7   :  { %v752_v44 = vsel %vm95_vm0, %v750_v43, 0.0  ;;  %v1539_v26 = vpop.permute.xlu1 %1538 }
 0x7b8   :  { %753 = vadd.xlane.f32.xlu0 %v752_v44  ;;  %v1541_v28 = vunpack.i.h.bf16 %v1539_v26  ;;  %v1540_v32 = vunpack.i.l.bf16 %v1539_v26 }
 0x7ba   :  { %v1461_v33 = vpack.c.bf16 %v1541_v28, %v1540_v32 }
 0x7bb   :  { %v1544_v34 = vpop.permute.xlu1 %1543 }
 0x7bc   :  { %756 = vadd.xlane.f32.xlu0 %v755_v41  ;;  %v1546_v35 = vunpack.i.h.bf16 %v1544_v34  ;;  %v1545_v36 = vunpack.i.l.bf16 %v1544_v34  ;;  %v1547_v34 = vpack.i.bf16 %v1904_v46, %v1902_v39 }
 0x7be   :  { %v1465_v37 = vpack.c.bf16 %v1546_v35, %v1545_v36 }
 0x7d2   :  { %1528 = vrot.lane.b32.xlu0 %v1527_v48, %s1721_s14 }
 0x845   :  { %v754_v58 = vpop.xlane.xlu0 %753 }
 0x846   :  { %v758_v59 = vmul.f32 0.03125, %v754_v58 }
 0x848   :  { %v760_v60 = vadd.f32 1e-12, %v758_v59 }
 0x849   :  { %v757_v61 = vpop.xlane.xlu0 %756 }
 0x84a   :  { %1577 = vrsqrt.f32 %v760_v60  ;;  %v759_v62 = vmul.f32 0.03125, %v757_v61 }
 0x84c   :  { %v761_v63 = vadd.f32 1e-12, %v759_v62  ;;  %v883_v62 = vsub.s32 7, %v1836_v27 }
 0x84d   :  { %v1927_v12 = vpop.permute.xlu0 %1528 }
 0x84e   :  { %1579 = vrsqrt.f32 %v761_v63  ;;  %v1531_v13 = vunpack.i.h.bf16 %v1927_v12  ;;  %v1530_v18 = vunpack.i.l.bf16 %v1927_v12  ;;  %v884_v63 = vrot.slane %v1839_v30, %v883_v62 }
 0x850   :  { %v1453_v20 = vpack.c.bf16 %v1531_v13, %v1530_v18 }
 0x852   :  { %1454 = vmatprep.subr.bf16.mxu0 %v1453_v20 }
 0x853   :  { %1456 = vmatpush3.bf16.msra.mxu0 %v1453_v20 }
 0x854   :  { %v1578_v3 = vpop.eup %1577  ;;  %1458 = vmatprep.subr.bf16.mxu0 %v1457_v25 }
 0x855   :  { %v764_v4 = vmul.f32 %v1578_v3, %v748_v40 }
 0x857   :  { %v770_v6 = vmul.f32 %v769_v2, %v764_v4  ;;  %1460 = vmatpush3.bf16.msra.mxu0 %v1457_v25 }
 0x858   :  { %v1580_v7 = vpop.eup %1579  ;;  %1462 = vmatprep.subr.bf16.mxu0 %v1461_v33 }
 0x859   :  { %v765_v8 = vmul.f32 %v1580_v7, %v749_v38  ;;  %v1922_v9 = vadd.f32 %v775_v5, %v770_v6  ;;  %v780_v38 = vsub.s32 6, %v1836_v27 }
 0x85b   :  { %v771_v10 = vmul.f32 %v769_v2, %v765_v8  ;;  %1369 = vmatprep.mubr.msk.f32.mxu1 %vm95_vm0, %v1922_v9  ;;  %1464 = vmatpush3.bf16.msra.mxu0 %v1461_v33  ;;  %v781_v40 = vrot.slane %v1839_v30, %v780_v38  ;;  %v1552_v8 = vpack.i.bf16 %v1910_v50, %v1908_v49  ;;  %v1724_v49 = vmov 0.0|0.0  }
 0x85c   :  { %1466 = vmatprep.subr.bf16.mxu0 %v1465_v37  ;;  %1469 = vmatprep.subr.bf16.mxu1 %v1724_v49  ;;  %v1726_v50 = vmov 0.0  }
 0x85d   :  { %v777_v11 = vadd.f32 %v775_v5, %v771_v10 }
 0x85f   :  { %1370 = vmatmul.mubr.msk.f32.vlgmr.msra.gmra.mrb[4].mxu1 %vm95_vm0, %v777_v11  ;;  %1468 = vmatpush3.bf16.msra.mxu0 %v1465_v37 }
 0x860   :  { %1395 = vmatprep.mubr.msk.f32.mxu1 %vm1725_vm4, %v1726_v50 }
 0x932   :  { %v1371_v43 = vpop.f32.mrb[4].mxu1 }
 0x933   :  { %v860_v44 = vadd.f32 %v1371_v43, %v781_v40  ;;  %v854_v45 = vpop.f32.mrb[5].mxu1 }
 0x934   :  { %v855_v41 = vadd.f32 %v854_v45, %v781_v40 }
 0x935   :  { %v866_v47 = vmul.f32 0.044715, %v860_v44  ;;  %v864_v59 = vmul.f32 0.5, %v860_v44 }
 0x936   :  { %v865_v51 = vmul.f32 0.044715, %v855_v41  ;;  %v863_v57 = vmul.f32 0.5, %v855_v41 }
 0x937   :  { %v868_v52 = vmul.f32 %v866_v47, %v860_v44 }
 0x938   :  { %v867_v53 = vmul.f32 %v865_v51, %v855_v41 }
 0x939   :  { %v870_v54 = vmul.f32 %v868_v52, %v860_v44 }
 0x93a   :  { %v869_v48 = vmul.f32 %v867_v53, %v855_v41 }
 0x93b   :  { %v872_v55 = vadd.f32 %v870_v54, %v860_v44  ;;  %v94_v44 = vld [vmem:[#allocation8 + $0x8] sm:$0x7] }
 0x93c   :  { %v871_v14 = vadd.f32 %v869_v48, %v855_v41  ;;  %v1030_v39 = vrot.slane %v94_v44, %v125_v29  ;;  %v1036_v45 = vrot.slane %v94_v44, %v131_v31  ;;  %v1042_v48 = vand.u32 127, %v123_v23 }
 0x93d   :  { %v874_v15 = vmul.f32 0.7978846, %v872_v55  ;;  %v1043_v55 = vmul.u32 8, %v1836_v27  ;;  %v1123_v62 = vrot.slane %v94_v44, %v137_v42 }
 0x93e   :  { %v873_v17 = vmul.f32 0.7978846, %v871_v14 }
 0x93f   :  { %1581 = vtanh.f32 %v874_v15  ;;  %vm1044_vm5 = vcmp.eq.s32.totalorder %v1042_v48, %v1043_v55 }
 0x940   :  { %1583 = vtanh.f32 %v873_v17  ;;  %v1256_v23 = vsel %vm1044_vm5, 1.0, %v1726_v50 }
 0x949   :  { %v1582_v16 = vpop.eup %1581 }
 0x94a   :  { %v1584_v19 = vpop.eup %1583  ;;  %v878_v56 = vadd.f32 1.0, %v1582_v16 }
 0x94b   :  { %v877_v58 = vadd.f32 1.0, %v1584_v19 }
 0x94c   :  { %v880_v61 = vmul.f32 %v878_v56, %v864_v59 }
 0x94d   :  { %v879_v60 = vmul.f32 %v877_v58, %v863_v57 }
 0x94f   :  { %1388 = vmatprep.mubr.msk.f32.mxu0 %vm917_vm3, %v879_v60 }
 0x950   :  { %1389 = vmatmul.mubr.msk.f32.vlgmr.msra.gmra.mrb[8].mxu0 %vm917_vm3, %v880_v61 }
 0xa23   :  { %v1390_v0 = vpop.f32.mrb[8].mxu0 }
 0xa24   :  { %v996_v1 = vadd.f32 %v1390_v0, %v884_v63  ;;  %v990_v2 = vpop.f32.mrb[9].mxu0 }
 0xa25   :  { %v991_v3 = vadd.f32 %v990_v2, %v884_v63 }
 0xa26   :  { %v1000_v4 = vadd.f32 %v996_v1, %v777_v11 }
 0xa27   :  { %v999_v5 = vadd.f32 %v991_v3, %v1922_v9 }
 0xa28   :  { %v1004_v6 = vsel %vm95_vm0, %v1000_v4, 0.0 }
 0xa29   :  { %1005 = vadd.xlane.f32.xlu1 %v1004_v6  ;;  %v1001_v7 = vsel %vm95_vm0, %v999_v5, 0.0 }
 0xa2a   :  { %1002 = vadd.xlane.f32.xlu0 %v1001_v7 }
 0xa3a   :  { %1553 = vrot.lane.b32.xlu1 %v1552_v8, %s1721_s14 }
 0xab6   :  { %v1006_v10 = vpop.xlane.xlu1 %1005 }
 0xab7   :  { %v1008_v30 = vmul.f32 0.03125, %v1006_v10  ;;  %v1003_v20 = vpop.xlane.xlu0 %1002 }
 0xab8   :  { %v1007_v25 = vmul.f32 0.03125, %v1003_v20 }
 0xab9   :  { %v1010_v26 = vsub.f32 %v1000_v4, %v1008_v30 }
 0xaba   :  { %v1009_v28 = vsub.f32 %v999_v5, %v1007_v25  ;;  %v1554_v16 = vpop.permute.xlu1 %1553 }
 0xabb   :  { %v1012_v32 = vmul.f32 %v1010_v26, %v1010_v26  ;;  %v1556_v56 = vunpack.i.h.bf16 %v1554_v16  ;;  %v1555_v57 = vunpack.i.l.bf16 %v1554_v16 }
 0xabc   :  { %v1011_v11 = vmul.f32 %v1009_v28, %v1009_v28 }
 0xabd   :  { %v1016_v33 = vsel %vm95_vm0, %v1012_v32, 0.0  ;;  %v1139_v60 = vsel %vm917_vm3, %v1556_v56, %v1536_v22  ;;  %v1138_v61 = vsel %vm917_vm3, %v1555_v57, %v1535_v24 }
 0xabe   :  { %v1013_v9 = vsel %vm95_vm0, %v1011_v11, 0.0  ;;  %v1476_v12 = vpack.c.bf16 %v1139_v60, %v1138_v61 }
 0xabf   :  { %1014 = vadd.xlane.f32.xlu0 %v1013_v9 }
 0xac3   :  { %1017 = vadd.xlane.f32.xlu0 %v1016_v33 }
 0xad9   :  { %1548 = vrot.lane.b32.xlu0 %v1547_v34, %s1721_s14 }
 0xb4c   :  { %v1015_v35 = vpop.xlane.xlu0 %1014 }
 0xb4d   :  { %v1019_v36 = vmul.f32 0.03125, %v1015_v35 }
 0xb4f   :  { %v1021_v37 = vadd.f32 1e-12, %v1019_v36 }
 0xb50   :  { %v1018_v38 = vpop.xlane.xlu0 %1017 }
 0xb51   :  { %1585 = vrsqrt.f32 %v1021_v37  ;;  %v1020_v40 = vmul.f32 0.03125, %v1018_v38 }
 0xb53   :  { %v1022_v43 = vadd.f32 1e-12, %v1020_v40 }
 0xb54   :  { %v1549_v53 = vpop.permute.xlu0 %1548 }
 0xb55   :  { %1587 = vrsqrt.f32 %v1022_v43  ;;  %v1551_v15 = vunpack.i.h.bf16 %v1549_v53  ;;  %v1550_v17 = vunpack.i.l.bf16 %v1549_v53 }
 0xb57   :  { %v1137_v31 = vsel %vm917_vm3, %v1551_v15, %v1531_v13  ;;  %v1136_v58 = vsel %vm917_vm3, %v1550_v17, %v1530_v18 }
 0xb58   :  { %v1473_v59 = vpack.c.bf16 %v1137_v31, %v1136_v58 }
 0xb5b   :  { %v1586_v46 = vpop.eup %1585 }
 0xb5c   :  { %v1025_v41 = vmul.f32 %v1586_v46, %v1009_v28 }
 0xb5e   :  { %v1031_v47 = vmul.f32 %v1030_v39, %v1025_v41 }
 0xb5f   :  { %v1588_v51 = vpop.eup %1587 }
 0xb60   :  { %v1026_v52 = vmul.f32 %v1588_v51, %v1010_v26  ;;  %v1037_v54 = vadd.f32 %v1036_v45, %v1031_v47 }
 0xb62   :  { %v1032_v14 = vmul.f32 %v1030_v39, %v1026_v52 }
 0xb64   :  { %v1038_v19 = vadd.f32 %v1036_v45, %v1032_v14 }
 0xb66   :  { %v1470_v29 = vpack.c.bf16 %v1038_v19, %v1037_v54 }
 0xb68   :  { %1471 = vmatpush3.bf16.msra.mxu1 %v1470_v29 }
 0xb69   :  { %1472 = vmatprep.subr.bf16.mxu1 %v1724_v49 }
 0xb6b   :  { %1396 = vmatmul.mubr.msk.f32.vlgmr.msra.gmra.mrb[6].mxu1 %vm226_vm1, %v1256_v23 }
 0xb6c   :  { %1474 = vmatpush3.bf16.msra.mxu1 %v1473_v59  ;;  %1406 = vmatprep.mubr.msk.f32.mxu1 %vm1725_vm4, %v1726_v50 }
 0xb6d   :  { %1475 = vmatprep.subr.bf16.mxu1 %v1724_v49 }
 0xb70   :  { %1477 = vmatpush3.bf16.msra.mxu1 %v1476_v12 }
 0xc3e   :  { %v1116_v13 = vpop.f32.mrb[6].mxu1 }
 0xc3f   :  { %v1397_v18 = vpop.f32.mrb[7].mxu1  ;;  %1407 = vmatmul.mubr.msk.f32.vlgmr.msra.gmra.mrb[8].mxu1 %vm95_vm0, %v1116_v13 }
 0xd12   :  { %v1213_v22 = vpop.f32.mrb[8].mxu1 }
 0xd13   :  { %v1214_v63 = vadd.f32 %v1213_v22, %v1123_v62  ;;  %v1408_v21 = vpop.f32.mrb[9].mxu1 }
 0xd15   :  { %1589 = vtanh.f32 %v1214_v63 }
 0xd1f   :  { %v1590_v24 = vpop.eup %1589 }
 0xd20   :  { %1218 = vst [vmem:[#allocation10] sm:$0x3] %v1590_v24 }
 0xd21   :  { %1690 = shalt.err (!%p1687_p8)
}
 0xd22   :  { %s1691_s23 = scalar_lea.hbm %s2000_s4, 32 }
 0xd23   :  { %p1692_p9 = scmp.ne.s32.totalorder %s2000_s4, %s1691_s23  ;;  %p1695_p10 = scmp.lt.u32.totalorder %s1691_s23, %s2000_s4 }
 0xd25   :  { %p1697_p11 = pnand %p1695_p10, %p1692_p9 }
 0xd27   :  { %1700 = shalt.err (!%p1697_p11)
}
 0xd28   :  { %1228 = dma.vmem_to_hbm [thread:$0]  %s1226_s19, 32, %s2000_s4, [#allocation4]  }
 0xd29   :  { %1707 = dma.done.wait [#allocation4], 32  }
 0xd2a   :  { %1708 = vsyncadd [#allocation4], 4294967264 }
 0xd2b   :  { %1232 = vsyncpa [#allocation3], 1 }
 0xd2c   :  { %1233 = vsyncpa [#allocation6], 1 }
 0xd2d   :  { %1234 = vsyncpa [#allocation9], 1 }
 0xd2e   :  { %1235 = vsyncpa [#allocation4], 1 }

</bundles_post_ra>
